<compile_context>
chip_gen: v7x
topology: tpu7x:2x2x1
jax: 0.10.0
libtpu: 0.0.40
codegen_flags: <defaults>
</compile_context>

<pallas_src>
import functools

import jax
import jax.numpy as jnp
from jax import lax
from jax.experimental import pallas as pl
from jax.experimental.pallas import tpu as pltpu


_SUB_TILE = 256  # rows per in-kernel sub-tile (bounds f32 live ranges)


def _round_up(x, m):
    return ((x + m - 1) // m) * m


# --------------------------------------------------------------------------
# Kernel
# --------------------------------------------------------------------------
def _mlp_kernel(n_linear, compute_dtype, sub_b, x_ref, *refs):
    """One batch tile of the fused MLP.

    refs = (w0, b0, w1, b1, ..., out).  Weights/biases are VMEM-resident
    whole-array blocks (constant index_map); x/out are (tile_b, dim) batch
    tiles.  MXU: matmuls with f32 accumulation.  EUP: tanh (f32).  VPU: bias.
    """
    out_ref = refs[-1]
    params = refs[:-1]
    tile_b = x_ref.shape[0]
    n_sub = tile_b // sub_b

    def run_rows(h):
        # Layer loop is unrolled (n_linear is small).
        # TODO(synk): for deep/wide MLPs whose resident weights overflow VMEM
        # (notably v7x's 64 MiB), stream stacked hidden weights through an
        # extra grid axis marked "arbitrary" instead of keeping all resident.
        for li in range(n_linear):
            w = params[2 * li][...]        # (in_p, out_p), VMEM-resident
            b = params[2 * li + 1][...]    # (1, out_p) f32
            z = jnp.dot(h, w, preferred_element_type=jnp.float32) + b
            if li < n_linear - 1:
                # tanh in f32 (EUP); single cast only to feed the next MXU pass.
                h = jnp.tanh(z).astype(compute_dtype)
            else:
                h = z                      # no nonlinearity on the final Linear
        return h

    if n_sub <= 1:
        out_ref[...] = run_rows(x_ref[...]).astype(out_ref.dtype)
    else:
        # Sub-tile the rows of a large batch tile to bound the live range of
        # the f32 z / compute-dtype h intermediates (v5e vreg/spill pressure).
        def body(s, carry):
            r0 = pl.multiple_of(s * sub_b, sub_b)
            h = run_rows(x_ref[pl.ds(r0, sub_b), :])
            out_ref[pl.ds(r0, sub_b), :] = h.astype(out_ref.dtype)
            return carry

        lax.fori_loop(0, n_sub, body, 0, unroll=True)


# --------------------------------------------------------------------------
# Generation-aware planning
# --------------------------------------------------------------------------
def _tpu_generation_info():
    """Returns (vmem_budget_bytes, assume_two_tensorcores)."""
    vmem_phys = None
    try:
        vmem_phys = int(pltpu.get_tpu_info().vmem_capacity_bytes)
    except Exception:  # noqa: BLE001 - query not available on this build
        pass
    kind = ""
    try:
        kind = jax.devices()[0].device_kind.lower()
    except Exception:  # noqa: BLE001
        pass
    # v7x is the 2-TensorCore / 64 MiB-VMEM generation.
    two_tc = ("v7" in kind) or ("7x" in kind) or (
        vmem_phys is not None and vmem_phys <= 64 * 1024 * 1024)
    if vmem_phys is None:
        budget = 48 * 1024 * 1024                       # conservative fallback
    elif vmem_phys <= 64 * 1024 * 1024:                 # v7x-like
        budget = min(vmem_phys - 12 * 1024 * 1024, 56 * 1024 * 1024)
    else:                                               # v5e / v6e (128 MiB)
        budget = min(vmem_phys - 16 * 1024 * 1024, 112 * 1024 * 1024)
    return budget, two_tc


def _plan_tiling(batch, dims_p, compute_dtype, out_dtype, tile_b_user,
                 budget, two_tc, buffer_factor):
    """Pick (tile_b, sub_b, n_tiles, vmem_limit_bytes)."""
    n_linear = len(dims_p) - 1
    cb = jnp.dtype(compute_dtype).itemsize
    ob = jnp.dtype(out_dtype).itemsize
    w_bytes = sum(dims_p[i] * dims_p[i + 1] * cb for i in range(n_linear))
    b_bytes = sum(8 * dims_p[i + 1] * 4 for i in range(n_linear))  # sublane pad
    param_bytes = buffer_factor * (w_bytes + b_bytes)
    max_d = max(dims_p)

    def footprint(t):
        sub = min(t, _SUB_TILE)
        streams = 2 * t * dims_p[0] * cb + 2 * t * dims_p[-1] * ob  # 2x buffered
        work = 4 * sub * max_d * 4                                  # f32 live vals
        return param_bytes + streams + work

    if footprint(16) > budget:
        raise ValueError(
            "MLP parameters (+ minimal I/O) exceed the VMEM budget "
            f"({footprint(16)} > {budget} bytes). "
            "TODO(synk): add a layer-streamed / K-tiled variant (stacked "
            "(n_layers, n_units, n_units) weight blocks on an 'arbitrary' "
            "grid axis) for models that fit HBM but not VMEM.")

    if tile_b_user is not None:
        tile_b = max(16, _round_up(int(tile_b_user), 16))
    else:
        tile_b = 16
        for cand in (32, 64, 128, 256, 512, 1024, 2048, 4096):
            if footprint(cand) <= budget:
                tile_b = cand
            else:
                break
        tile_b = min(tile_b, _round_up(batch, 16))
        if two_tc and batch >= 32:
            # Keep >= 2 grid steps so the "parallel" batch axis can shard
            # across both v7x TensorCores.
            tile_b = min(tile_b, max(16, _round_up((batch + 1) // 2, 16)))

    sub_b = min(tile_b, _SUB_TILE)
    tile_b = _round_up(tile_b, sub_b)       # tile divides evenly into sub-tiles
    batch_p = _round_up(batch, tile_b)
    n_tiles = batch_p // tile_b
    vmem_limit = int(min(budget, max(footprint(tile_b) + (8 << 20), 32 << 20)))
    return tile_b, sub_b, n_tiles, vmem_limit


# --------------------------------------------------------------------------
# pallas_call builder (cached per static configuration) + public API
# --------------------------------------------------------------------------
@functools.lru_cache(maxsize=None)
def _build_forward(dims, dims_p, compute_dtype, out_dtype, tile_b, sub_b,
                   n_tiles, single_buffer, vmem_limit_bytes):
    n_linear = len(dims) - 1
    batch_p = tile_b * n_tiles
    cb = jnp.dtype(compute_dtype).itemsize
    ob = jnp.dtype(out_dtype).itemsize

    kernel = functools.partial(_mlp_kernel, n_linear, compute_dtype, sub_b)

    def param_spec(shape):
        if single_buffer:
            # Grid-invariant block: one VMEM buffer instead of the default two.
            return pl.BlockSpec(shape, lambda i: (0, 0),
                                pipeline_mode=pl.Buffered(1))
        return pl.BlockSpec(shape, lambda i: (0, 0))

    in_specs = [pl.BlockSpec((tile_b, dims_p[0]), lambda i: (i, 0))]
    for li in range(n_linear):
        in_specs.append(param_spec((dims_p[li], dims_p[li + 1])))
        in_specs.append(param_spec((1, dims_p[li + 1])))
    out_spec = pl.BlockSpec((tile_b, dims_p[-1]), lambda i: (i, 0))

    flops = 2 * batch_p * sum(dims_p[i] * dims_p[i + 1] for i in range(n_linear))
    transc = batch_p * sum(dims_p[i + 1] for i in range(n_linear - 1))
    bytes_acc = (batch_p * dims_p[0] * cb
                 + sum(dims_p[i] * dims_p[i + 1] * cb + dims_p[i + 1] * 4
                       for i in range(n_linear))
                 + batch_p * dims_p[-1] * ob)
    cost = pl.CostEstimate(flops=flops, transcendentals=transc,
                           bytes_accessed=bytes_acc)

    call = pl.pallas_call(
        kernel,
        out_shape=jax.ShapeDtypeStruct((batch_p, dims_p[-1]), out_dtype),
        grid_spec=pltpu.PrefetchScalarGridSpec(
            num_scalar_prefetch=0,
            grid=(n_tiles,),
            in_specs=in_specs,
            out_specs=out_spec,
        ),
        compiler_params=pltpu.CompilerParams(
            dimension_semantics=("parallel",),
            vmem_limit_bytes=vmem_limit_bytes,
        ),
        cost_estimate=cost,
    )

    n_out = dims[-1]

    def fwd(x, flat_params):
        batch, n_in = x.shape
        # Only x's (cheap) batch pad + cast happens per call, fused under jit;
        # the feature pad is a no-op when n_inputs is already a multiple of 16.
        x_p = jnp.zeros((batch_p, dims_p[0]), compute_dtype)
        x_p = x_p.at[:batch, :n_in].set(x.astype(compute_dtype))
        out_padded = call(x_p, *flat_params)
        return out_padded[:batch, :n_out]

    return jax.jit(fwd)


def prepare_mlp_params(weights, biases, compute_dtype=jnp.bfloat16):
    """Pad + cast the MLP parameters ONCE (hoisted out of the forward path).

    weights[i]: (in_dim, out_dim) -- already transposed vs torch's (out, in)
    biases[i]:  (out_dim,)

    Hidden/output feature dims are padded to multiples of 128 (lane-dense MXU
    feeds, unmasked dense output stores); the *input* feature dim is only
    padded to a multiple of 16 so x's HBM stream stays essentially unpadded.
    """
    n_linear = len(weights)
    assert len(biases) == n_linear and n_linear >= 1
    dims = tuple([weights[0].shape[0]] + [w.shape[1] for w in weights])
    dims_p = tuple([_round_up(dims[0], 16)] +
                   [_round_up(d, 128) for d in dims[1:]])
    flat = []
    for li, (w, b) in enumerate(zip(weights, biases)):
        in_p, out_p = dims_p[li], dims_p[li + 1]
        w_p = jnp.zeros((in_p, out_p), compute_dtype)
        w_p = w_p.at[: w.shape[0], : w.shape[1]].set(w.astype(compute_dtype))
        b_p = jnp.zeros((1, out_p), jnp.float32)
        b_p = b_p.at[0, : b.shape[0]].set(b.astype(jnp.float32))
        flat += [w_p, b_p]
    meta = {"dims": dims, "dims_p": dims_p, "compute_dtype": compute_dtype}
    return tuple(flat), meta


def mlp_forward(x, flat_params, meta, *, tile_b=None, out_dtype=jnp.float32):
    """Fused MLP forward.  `flat_params` / `meta` come from prepare_mlp_params.

    out_dtype=jnp.bfloat16 halves output writeback bytes when downstream
    accepts it; default f32 keeps parity with the PyTorch module.
    """
    dims, dims_p = meta["dims"], meta["dims_p"]
    compute_dtype = meta["compute_dtype"]
    batch, n_in = x.shape
    assert n_in == dims[0], (n_in, dims[0])

    budget, two_tc = _tpu_generation_info()

    # Try single-buffered resident params first (halves their VMEM footprint,
    # frees room for a bigger batch tile); fall back to default double
    # buffering if this JAX/Mosaic build rejects pipeline_mode=Buffered(1).
    err = None
    for single_buffer in (True, False):
        buffer_factor = 1 if single_buffer else 2
        tb, sb, nt, vmem_limit = _plan_tiling(
            batch, dims_p, compute_dtype, out_dtype, tile_b,
            budget, two_tc, buffer_factor)
        try:
            fwd = _build_forward(dims, dims_p, compute_dtype, out_dtype,
                                 tb, sb, nt, single_buffer, vmem_limit)
            return fwd(x, flat_params)
        except Exception as e:  # noqa: BLE001
            if not single_buffer:
                raise
            err = e             # retry with default double buffering
    raise err  # unreachable


# --------------------------------------------------------------------------
# Reference + init (for the demo / correctness check)
# --------------------------------------------------------------------------
def init_mlp_params(key, n_inputs, n_outputs, n_layers=1, n_units=100):
    """Deterministic init matching the PyTorch layer structure.

    Returns weights already transposed to (in_dim, out_dim).
    """
    dims = [n_inputs] + [n_units] * (n_layers + 1) + [n_outputs]
    weights, biases = [], []
    for i in range(len(dims) - 1):
        key, wk, bk = jax.random.split(key, 3)
        fan_in, fan_out = dims[i], dims[i + 1]
        bound = 1.0 / jnp.sqrt(fan_in)  # same scale family as torch.nn.Linear
        weights.append(jax.random.uniform(
            wk, (fan_in, fan_out), jnp.float32, minval=-bound, maxval=bound))
        biases.append(jax.random.uniform(
            bk, (fan_out,), jnp.float32, minval=-bound, maxval=bound))
    return weights, biases


def mlp_reference(x, weights, biases):
    """Plain-JAX full-precision reference."""
    h = x
    n_linear = len(weights)
    for i, (w, b) in enumerate(zip(weights, biases)):
        h = jnp.dot(h, w, precision=jax.lax.Precision.HIGHEST) + b
        if i < n_linear - 1:
            h = jnp.tanh(h)
    return h


if __name__ == "__main__":
    # Small shapes consistent with the module: x is (batch, n_inputs).
    batch, n_inputs, n_outputs, n_layers, n_units = 64, 16, 8, 1, 32

    key = jax.random.PRNGKey(0)
    key, xk = jax.random.split(key)
    x = jax.random.normal(xk, (batch, n_inputs), jnp.float32)
    weights, biases = init_mlp_params(
        key, n_inputs, n_outputs, n_layers=n_layers, n_units=n_units)
    ref = mlp_reference(x, weights, biases)

    # Default path: bf16 MXU feeds, f32 accumulation.  Params padded/cast ONCE.
    params_bf16, meta_bf16 = prepare_mlp_params(weights, biases, jnp.bfloat16)
    out = jax.block_until_ready(mlp_forward(x, params_bf16, meta_bf16))
    assert out.shape == (batch, n_outputs)
    assert jnp.allclose(out, ref, atol=2e-2, rtol=2e-2), "bf16 path mismatch"

    # Exercise the multi-sub-tile (fori_loop) path inside one large batch tile.
    out_big = jax.block_until_ready(
        mlp_forward(x, params_bf16, meta_bf16, tile_b=512))
    assert jnp.allclose(out_big, ref, atol=2e-2, rtol=2e-2), "large-tile mismatch"

    # Strict-parity option from the review: f32 matmuls everywhere.
    # (Tolerance kept conservative; typical error is ~1e-6 on this path.)
    params_f32, meta_f32 = prepare_mlp_params(weights, biases, jnp.float32)
    out_f32 = jax.block_until_ready(mlp_forward(x, params_f32, meta_f32))
    assert jnp.allclose(out_f32, ref, atol=1e-2, rtol=1e-2), "f32 path mismatch"

    # TODO(synk): MLP.jacobian() (backward-style Delta product) is not part of
    # forward(); not implemented as a Pallas kernel here.

    print("KERNEL_OK")
</pallas_src>

<mosaic_0001>
module attributes {stable_mosaic.version = 11 : i64} {
  func.func @_mlp_kernel(%arg0: i32, %arg1: memref<64x16xbf16, #tpu.memory_space<vmem>>, %arg2: memref<16x128xbf16, #tpu.memory_space<vmem>>, %arg3: memref<1x128xf32, #tpu.memory_space<vmem>>, %arg4: memref<128x128xbf16, #tpu.memory_space<vmem>>, %arg5: memref<1x128xf32, #tpu.memory_space<vmem>>, %arg6: memref<128x128xbf16, #tpu.memory_space<vmem>>, %arg7: memref<1x128xf32, #tpu.memory_space<vmem>>, %arg8: memref<64x128xf32, #tpu.memory_space<vmem>>) attributes {dimension_semantics = [#tpu.dimension_semantics<parallel>], iteration_bounds = array<i64: 1>, scalar_prefetch = 0 : i64, scratch_operands = 0 : i64, tpu.core_type = #tpu.core_type<tc>, window_params = [{transform_indices = @transform_0, window_bounds = array<i64: 64, 16>}, {pipeline_mode = #tpu.pipeline_mode<synchronous>, transform_indices = @transform_1, window_bounds = array<i64: 16, 128>}, {pipeline_mode = #tpu.pipeline_mode<synchronous>, transform_indices = @transform_2, window_bounds = array<i64: 1, 128>}, {pipeline_mode = #tpu.pipeline_mode<synchronous>, transform_indices = @transform_3, window_bounds = array<i64: 128, 128>}, {pipeline_mode = #tpu.pipeline_mode<synchronous>, transform_indices = @transform_4, window_bounds = array<i64: 1, 128>}, {pipeline_mode = #tpu.pipeline_mode<synchronous>, transform_indices = @transform_5, window_bounds = array<i64: 128, 128>}, {pipeline_mode = #tpu.pipeline_mode<synchronous>, transform_indices = @transform_6, window_bounds = array<i64: 1, 128>}, {transform_indices = @transform_7, window_bounds = array<i64: 64, 128>}]} {
    %c0 = arith.constant 0 : index
    %c0_0 = arith.constant 0 : index
    %0 = vector.load %arg1[%c0, %c0_0] : memref<64x16xbf16, #tpu.memory_space<vmem>>, vector<64x16xbf16>
    %c0_1 = arith.constant 0 : index
    %c0_2 = arith.constant 0 : index
    %1 = vector.load %arg2[%c0_1, %c0_2] : memref<16x128xbf16, #tpu.memory_space<vmem>>, vector<16x128xbf16>
    %c0_3 = arith.constant 0 : index
    %c0_4 = arith.constant 0 : index
    %2 = vector.load %arg3[%c0_3, %c0_4] : memref<1x128xf32, #tpu.memory_space<vmem>>, vector<1x128xf32>
    %cst = arith.constant dense<0.000000e+00> : vector<64x128xf32>
    %3 = tpu.matmul %0, %1, %cst {dimension_numbers = #tpu.dot_dimension_numbers<[1], [0], [0], [1], [0, 0, 1, 1], [], []>} : vector<64x16xbf16>, vector<16x128xbf16>, vector<64x128xf32> -> vector<64x128xf32>
    %4 = vector.broadcast %2 : vector<1x128xf32> to vector<64x128xf32>
    %5 = arith.addf %3, %4 : vector<64x128xf32>
    %6 = math.tanh %5 : vector<64x128xf32>
    %7 = arith.truncf %6 : vector<64x128xf32> to vector<64x128xbf16>
    %c0_5 = arith.constant 0 : index
    %c0_6 = arith.constant 0 : index
    %8 = vector.load %arg4[%c0_5, %c0_6] : memref<128x128xbf16, #tpu.memory_space<vmem>>, vector<128x128xbf16>
    %c0_7 = arith.constant 0 : index
    %c0_8 = arith.constant 0 : index
    %9 = vector.load %arg5[%c0_7, %c0_8] : memref<1x128xf32, #tpu.memory_space<vmem>>, vector<1x128xf32>
    %cst_9 = arith.constant dense<0.000000e+00> : vector<64x128xf32>
    %10 = tpu.matmul %7, %8, %cst_9 {dimension_numbers = #tpu.dot_dimension_numbers<[1], [0], [0], [1], [0, 0, 1, 1], [], []>} : vector<64x128xbf16>, vector<128x128xbf16>, vector<64x128xf32> -> vector<64x128xf32>
    %11 = vector.broadcast %9 : vector<1x128xf32> to vector<64x128xf32>
    %12 = arith.addf %10, %11 : vector<64x128xf32>
    %13 = math.tanh %12 : vector<64x128xf32>
    %14 = arith.truncf %13 : vector<64x128xf32> to vector<64x128xbf16>
    %c0_10 = arith.constant 0 : index
    %c0_11 = arith.constant 0 : index
    %15 = vector.load %arg6[%c0_10, %c0_11] : memref<128x128xbf16, #tpu.memory_space<vmem>>, vector<128x128xbf16>
    %c0_12 = arith.constant 0 : index
    %c0_13 = arith.constant 0 : index
    %16 = vector.load %arg7[%c0_12, %c0_13] : memref<1x128xf32, #tpu.memory_space<vmem>>, vector<1x128xf32>
    %cst_14 = arith.constant dense<0.000000e+00> : vector<64x128xf32>
    %17 = tpu.matmul %14, %15, %cst_14 {dimension_numbers = #tpu.dot_dimension_numbers<[1], [0], [0], [1], [0, 0, 1, 1], [], []>} : vector<64x128xbf16>, vector<128x128xbf16>, vector<64x128xf32> -> vector<64x128xf32>
    %18 = vector.broadcast %16 : vector<1x128xf32> to vector<64x128xf32>
    %19 = arith.addf %17, %18 : vector<64x128xf32>
    %c0_15 = arith.constant 0 : index
    %c0_16 = arith.constant 0 : index
    %20 = vector.load %arg8[%c0_15, %c0_16] : memref<64x128xf32, #tpu.memory_space<vmem>>, vector<64x128xf32>
    tpu.vector_store %arg8[%c0_15, %c0_16], %19 {strides = array<i32>} : memref<64x128xf32, #tpu.memory_space<vmem>>, vector<64x128xf32>,
    return
  }
  func.func @transform_0(%arg0: i32) -> (i32, i32) {
    %c0_i32 = arith.constant 0 : i32
    %c0_i32_0 = arith.constant 0 : i32
    return %arg0, %c0_i32 : i32, i32
  }
  func.func @transform_1(%arg0: i32) -> (i32, i32) {
    %c0_i32 = arith.constant 0 : i32
    %c0_i32_0 = arith.constant 0 : i32
    %c0_i32_1 = arith.constant 0 : i32
    return %c0_i32, %c0_i32_0 : i32, i32
  }
  func.func @transform_2(%arg0: i32) -> (i32, i32) {
    %c0_i32 = arith.constant 0 : i32
    %c0_i32_0 = arith.constant 0 : i32
    %c0_i32_1 = arith.constant 0 : i32
    return %c0_i32, %c0_i32_0 : i32, i32
  }
  func.func @transform_3(%arg0: i32) -> (i32, i32) {
    %c0_i32 = arith.constant 0 : i32
    %c0_i32_0 = arith.constant 0 : i32
    %c0_i32_1 = arith.constant 0 : i32
    return %c0_i32, %c0_i32_0 : i32, i32
  }
  func.func @transform_4(%arg0: i32) -> (i32, i32) {
    %c0_i32 = arith.constant 0 : i32
    %c0_i32_0 = arith.constant 0 : i32
    %c0_i32_1 = arith.constant 0 : i32
    return %c0_i32, %c0_i32_0 : i32, i32
  }
  func.func @transform_5(%arg0: i32) -> (i32, i32) {
    %c0_i32 = arith.constant 0 : i32
    %c0_i32_0 = arith.constant 0 : i32
    %c0_i32_1 = arith.constant 0 : i32
    return %c0_i32, %c0_i32_0 : i32, i32
  }
  func.func @transform_6(%arg0: i32) -> (i32, i32) {
    %c0_i32 = arith.constant 0 : i32
    %c0_i32_0 = arith.constant 0 : i32
    %c0_i32_1 = arith.constant 0 : i32
    return %c0_i32, %c0_i32_0 : i32, i32
  }
  func.func @transform_7(%arg0: i32) -> (i32, i32) {
    %c0_i32 = arith.constant 0 : i32
    %c0_i32_0 = arith.constant 0 : i32
    return %arg0, %c0_i32 : i32, i32
  }
}

module attributes {stable_mosaic.version = 11 : i64} {
  func.func @_mlp_kernel(%arg0: i32, %arg1: memref<64x16xbf16, #tpu.memory_space<vmem>>, %arg2: memref<16x128xbf16, #tpu.memory_space<vmem>>, %arg3: memref<1x128xf32, #tpu.memory_space<vmem>>, %arg4: memref<128x128xbf16, #tpu.memory_space<vmem>>, %arg5: memref<1x128xf32, #tpu.memory_space<vmem>>, %arg6: memref<128x128xbf16, #tpu.memory_space<vmem>>, %arg7: memref<1x128xf32, #tpu.memory_space<vmem>>, %arg8: memref<64x128xf32, #tpu.memory_space<vmem>>) attributes {dimension_semantics = [#tpu.dimension_semantics<parallel>], iteration_bounds = array<i64: 1>, scalar_prefetch = 0 : i64, scratch_operands = 0 : i64, tpu.core_type = #tpu.core_type<tc>, window_params = [{transform_indices = @transform_0, window_bounds = array<i64: 64, 16>}, {pipeline_mode = #tpu.pipeline_mode<synchronous>, transform_indices = @transform_1, window_bounds = array<i64: 16, 128>}, {pipeline_mode = #tpu.pipeline_mode<synchronous>, transform_indices = @transform_2, window_bounds = array<i64: 1, 128>}, {pipeline_mode = #tpu.pipeline_mode<synchronous>, transform_indices = @transform_3, window_bounds = array<i64: 128, 128>}, {pipeline_mode = #tpu.pipeline_mode<synchronous>, transform_indices = @transform_4, window_bounds = array<i64: 1, 128>}, {pipeline_mode = #tpu.pipeline_mode<synchronous>, transform_indices = @transform_5, window_bounds = array<i64: 128, 128>}, {pipeline_mode = #tpu.pipeline_mode<synchronous>, transform_indices = @transform_6, window_bounds = array<i64: 1, 128>}, {transform_indices = @transform_7, window_bounds = array<i64: 64, 128>}]} {
    %c0 = arith.constant 0 : index
    %c0_0 = arith.constant 0 : index
    %0 = vector.load %arg1[%c0, %c0_0] : memref<64x16xbf16, #tpu.memory_space<vmem>>, vector<64x16xbf16>
    %c0_1 = arith.constant 0 : index
    %c0_2 = arith.constant 0 : index
    %1 = vector.load %arg2[%c0_1, %c0_2] : memref<16x128xbf16, #tpu.memory_space<vmem>>, vector<16x128xbf16>
    %c0_3 = arith.constant 0 : index
    %c0_4 = arith.constant 0 : index
    %2 = vector.load %arg3[%c0_3, %c0_4] : memref<1x128xf32, #tpu.memory_space<vmem>>, vector<1x128xf32>
    %cst = arith.constant dense<0.000000e+00> : vector<64x128xf32>
    %3 = tpu.matmul %0, %1, %cst {dimension_numbers = #tpu.dot_dimension_numbers<[1], [0], [0], [1], [0, 0, 1, 1], [], []>} : vector<64x16xbf16>, vector<16x128xbf16>, vector<64x128xf32> -> vector<64x128xf32>
    %4 = vector.broadcast %2 : vector<1x128xf32> to vector<64x128xf32>
    %5 = arith.addf %3, %4 : vector<64x128xf32>
    %6 = math.tanh %5 : vector<64x128xf32>
    %7 = arith.truncf %6 : vector<64x128xf32> to vector<64x128xbf16>
    %c0_5 = arith.constant 0 : index
    %c0_6 = arith.constant 0 : index
    %8 = vector.load %arg4[%c0_5, %c0_6] : memref<128x128xbf16, #tpu.memory_space<vmem>>, vector<128x128xbf16>
    %c0_7 = arith.constant 0 : index
    %c0_8 = arith.constant 0 : index
    %9 = vector.load %arg5[%c0_7, %c0_8] : memref<1x128xf32, #tpu.memory_space<vmem>>, vector<1x128xf32>
    %cst_9 = arith.constant dense<0.000000e+00> : vector<64x128xf32>
    %10 = tpu.matmul %7, %8, %cst_9 {dimension_numbers = #tpu.dot_dimension_numbers<[1], [0], [0], [1], [0, 0, 1, 1], [], []>} : vector<64x128xbf16>, vector<128x128xbf16>, vector<64x128xf32> -> vector<64x128xf32>
    %11 = vector.broadcast %9 : vector<1x128xf32> to vector<64x128xf32>
    %12 = arith.addf %10, %11 : vector<64x128xf32>
    %13 = math.tanh %12 : vector<64x128xf32>
    %14 = arith.truncf %13 : vector<64x128xf32> to vector<64x128xbf16>
    %c0_10 = arith.constant 0 : index
    %c0_11 = arith.constant 0 : index
    %15 = vector.load %arg6[%c0_10, %c0_11] : memref<128x128xbf16, #tpu.memory_space<vmem>>, vector<128x128xbf16>
    %c0_12 = arith.constant 0 : index
    %c0_13 = arith.constant 0 : index
    %16 = vector.load %arg7[%c0_12, %c0_13] : memref<1x128xf32, #tpu.memory_space<vmem>>, vector<1x128xf32>
    %cst_14 = arith.constant dense<0.000000e+00> : vector<64x128xf32>
    %17 = tpu.matmul %14, %15, %cst_14 {dimension_numbers = #tpu.dot_dimension_numbers<[1], [0], [0], [1], [0, 0, 1, 1], [], []>} : vector<64x128xbf16>, vector<128x128xbf16>, vector<64x128xf32> -> vector<64x128xf32>
    %18 = vector.broadcast %16 : vector<1x128xf32> to vector<64x128xf32>
    %19 = arith.addf %17, %18 : vector<64x128xf32>
    %c0_15 = arith.constant 0 : index
    %c0_16 = arith.constant 0 : index
    %20 = vector.load %arg8[%c0_15, %c0_16] : memref<64x128xf32, #tpu.memory_space<vmem>>, vector<64x128xf32>
    tpu.vector_store %arg8[%c0_15, %c0_16], %19 {strides = array<i32>} : memref<64x128xf32, #tpu.memory_space<vmem>>, vector<64x128xf32>,
    return
  }
  func.func @transform_0(%arg0: i32) -> (i32, i32) {
    %c0_i32 = arith.constant 0 : i32
    %c0_i32_0 = arith.constant 0 : i32
    return %arg0, %c0_i32 : i32, i32
  }
  func.func @transform_1(%arg0: i32) -> (i32, i32) {
    %c0_i32 = arith.constant 0 : i32
    %c0_i32_0 = arith.constant 0 : i32
    %c0_i32_1 = arith.constant 0 : i32
    return %c0_i32, %c0_i32_0 : i32, i32
  }
  func.func @transform_2(%arg0: i32) -> (i32, i32) {
    %c0_i32 = arith.constant 0 : i32
    %c0_i32_0 = arith.constant 0 : i32
    %c0_i32_1 = arith.constant 0 : i32
    return %c0_i32, %c0_i32_0 : i32, i32
  }
  func.func @transform_3(%arg0: i32) -> (i32, i32) {
    %c0_i32 = arith.constant 0 : i32
    %c0_i32_0 = arith.constant 0 : i32
    %c0_i32_1 = arith.constant 0 : i32
    return %c0_i32, %c0_i32_0 : i32, i32
  }
  func.func @transform_4(%arg0: i32) -> (i32, i32) {
    %c0_i32 = arith.constant 0 : i32
    %c0_i32_0 = arith.constant 0 : i32
    %c0_i32_1 = arith.constant 0 : i32
    return %c0_i32, %c0_i32_0 : i32, i32
  }
  func.func @transform_5(%arg0: i32) -> (i32, i32) {
    %c0_i32 = arith.constant 0 : i32
    %c0_i32_0 = arith.constant 0 : i32
    %c0_i32_1 = arith.constant 0 : i32
    return %c0_i32, %c0_i32_0 : i32, i32
  }
  func.func @transform_6(%arg0: i32) -> (i32, i32) {
    %c0_i32 = arith.constant 0 : i32
    %c0_i32_0 = arith.constant 0 : i32
    %c0_i32_1 = arith.constant 0 : i32
    return %c0_i32, %c0_i32_0 : i32, i32
  }
  func.func @transform_7(%arg0: i32) -> (i32, i32) {
    %c0_i32 = arith.constant 0 : i32
    %c0_i32_0 = arith.constant 0 : i32
    return %arg0, %c0_i32 : i32, i32
  }
}

</mosaic_0001>

<bundles_post_ra>
// kernel: fwd.1
= control target key start
LH: loop header
LB: loop body
LE: loop exit
PB: predicated region body
PF: predicated region fallthrough
CT: control target
= control target key end

     0   :  { %12 = vsyncpa [#allocation3], 0  ;;  %s666_s24 = smov [#allocation2]   ;;  %s797_s0 = inlined_call_operand.vmem [shape: bf16[64,16], index: 0, kind: input, shape index: {}]   ;;  %s798_s1 = inlined_call_operand.vmem [shape: bf16[16,128], index: 1, kind: input, shape index: {}]   ;;  %s799_s2 = inlined_call_operand.vmem [shape: f32[1,128], index: 2, kind: input, shape index: {}]   ;;  %s800_s3 = inlined_call_operand.vmem [shape: bf16[128,128], index: 3, kind: input, shape index: {}]   ;;  %s801_s4 = inlined_call_operand.vmem [shape: f32[1,128], index: 4, kind: input, shape index: {}]   ;;  %s802_s5 = inlined_call_operand.hbm [shape: bf16[128,128], index: 5, kind: input, shape index: {}]   ;;  %s803_s6 = inlined_call_operand.vmem [shape: f32[1,128], index: 6, kind: input, shape index: {}]   ;;  %s804_s7 = inlined_call_operand.vmem [shape: f32[64,128], index: 7, kind: output, shape index: {}]  }
   0x1   :  { %s28_s25 = sshll.u32 %s666_s24, 4  ;;  %s642_s28 = scalar_lea.hbm %s802_s5, 1024  ;;  %s29_s25 = int_to_ptr.vmem [resolvable:$true] %s28_s25 }
   0x2   :  { %p643_p0 = scmp.ne.s32.totalorder %s802_s5, %s642_s28  ;;  %p646_p1 = scmp.lt.u32.totalorder %s642_s28, %s802_s5 }
   0x4   :  { %p648_p2 = pnand %p646_p1, %p643_p0 }
   0x6   :  { %651 = shalt.err (!%p648_p2)
}
   0x7   :  { %s652_s10 = scalar_lea.vmem %s29_s25, 1024  ;;  %p657_p4 = scmp.lt.s32.totalorder %s29_s25, %s29_s25 }
   0x8   :  { %p653_p3 = scmp.ne.s32.totalorder %s29_s25, %s652_s10  ;;  %p658_p5 = scmp.lt.s32.totalorder %s652_s10, %s652_s10 }
   0xa   :  { %p659_p6 = por %p658_p5, %p657_p4 }
   0xc   :  { %p660_p7 = pnand %p659_p6, %p653_p3 }
   0xe   :  { %663 = shalt.err (!%p660_p7)
}
   0xf   :  { %s667_s11 = smov 64   ;;  %s668_s12 = smov 4  }
  0x10   :  { %34 = dma.hbm_to_vmem [thread:$0]  %s802_s5, 1024, %s29_s25, [#allocation3], %s667_s11, %s667_s11, %s668_s12  }
  0x11   :  { %664 = dma.done.wait [#allocation3], 1024  }
  0x12   :  { %665 = vsyncadd [#allocation3], 4294966272  ;;  %v589_v0 = vld [vmem:[%s798_s1] sm:$0xff]   ;;  %vm84_vm0 = vcmask 130048   ;;  %v591_v2 = vld [vmem:[%s797_s0 + $0x8] sm:$0xff]  }
  0x13   :  { %v590_v1 = vld [vmem:[%s797_s0] sm:$0xff]   ;;  %528 = vmatprep.subr.bf16.mxu0 %v589_v0  ;;  %v592_v3 = vld [vmem:[%s797_s0 + $0x10] sm:$0xff]   ;;  %v595_v5 = vld [vmem:[%s800_s3 + $0x8] sm:$0xff]  }
  0x14   :  { %529 = vmatpush3.bf16.msra.mxu0 %v589_v0  ;;  %530 = vmatprep.mubr.msk.bf16.mxu0 %vm84_vm0, %v590_v1  ;;  %v594_v4 = vld [vmem:[%s800_s3] sm:$0xff]   ;;  %v596_v6 = vld [vmem:[%s800_s3 + $0x10] sm:$0xff]   ;;  %v593_v7 = vld [vmem:[%s797_s0 + $0x18] sm:$0xff]  }
  0x15   :  { %538 = vmatprep.subr.bf16.mxu1 %v594_v4  ;;  %v597_v8 = vld [vmem:[%s800_s3 + $0x18] sm:$0xff]   ;;  %v598_v9 = vld [vmem:[%s800_s3 + $0x20] sm:$0xff]   ;;  %v599_v10 = vld [vmem:[%s800_s3 + $0x28] sm:$0xff]  }
  0x16   :  { %539 = vmatpush3.bf16.msra.mxu1 %v594_v4  ;;  %v600_v11 = vld [vmem:[%s800_s3 + $0x30] sm:$0xff]   ;;  %v601_v12 = vld [vmem:[%s800_s3 + $0x38] sm:$0xff]   ;;  %v602_v13 = vld [vmem:[#allocation2] sm:$0xff]  }
  0x17   :  { %531 = vmatmul.mubr.msk.bf16.vlgmr.msra.gmra.mrb[0].mxu0 %vm84_vm0, %v591_v2  ;;  %540 = vmatprep.subr.bf16.mxu1 %v595_v5  ;;  %v603_v14 = vld [vmem:[#allocation2 + $0x8] sm:$0xff]   ;;  %v604_v15 = vld [vmem:[#allocation2 + $0x10] sm:$0xff]   ;;  %v471_v16 = vld [vmem:[%s799_s2] ss:$0 sm:$0xff] }
  0x18   :  { %534 = vmatprep.mubr.msk.bf16.mxu0 %vm84_vm0, %v592_v3  ;;  %562 = vmatprep.subr.bf16.mxu0 %v602_v13  ;;  %v605_v45 = vld [vmem:[#allocation2 + $0x18] sm:$0xff]   ;;  %v606_v46 = vld [vmem:[#allocation2 + $0x20] sm:$0xff]   ;;  %v607_v47 = vld [vmem:[#allocation2 + $0x28] sm:$0xff]  }
  0x19   :  { %563 = vmatpush3.bf16.msra.mxu0 %v602_v13  ;;  %v608_v48 = vld [vmem:[#allocation2 + $0x30] sm:$0xff]   ;;  %v609_v49 = vld [vmem:[#allocation2 + $0x38] sm:$0xff]   ;;  %v481_v50 = vld [vmem:[%s801_s4] ss:$0 sm:$0xff] }
  0x1a   :  { %541 = vmatpush3.bf16.msra.mxu1 %v595_v5  ;;  %564 = vmatprep.subr.bf16.mxu0 %v603_v14 }
  0x1b   :  { %542 = vmatprep.subr.bf16.mxu1 %v596_v6 }
  0x1d   :  { %565 = vmatpush3.bf16.msra.mxu0 %v603_v14 }
  0x1e   :  { %543 = vmatpush3.bf16.msra.mxu1 %v596_v6  ;;  %566 = vmatprep.subr.bf16.mxu0 %v604_v15 }
  0x1f   :  { %535 = vmatmul.mubr.msk.bf16.gmra.mrb[4].mxu0 %vm84_vm0, %v593_v7  ;;  %544 = vmatprep.subr.bf16.mxu1 %v597_v8 }
  0x21   :  { %567 = vmatpush3.bf16.msra.mxu0 %v604_v15  ;;  %v490_v15 = vld [vmem:[%s803_s6] ss:$0 sm:$0xff] }
  0x22   :  { %545 = vmatpush3.bf16.msra.mxu1 %v597_v8  ;;  %568 = vmatprep.subr.bf16.mxu0 %v605_v45 }
  0x23   :  { %546 = vmatprep.subr.bf16.mxu1 %v598_v9 }
  0x25   :  { %569 = vmatpush3.bf16.msra.mxu0 %v605_v45 }
  0x26   :  { %547 = vmatpush3.bf16.msra.mxu1 %v598_v9  ;;  %570 = vmatprep.subr.bf16.mxu0 %v606_v46 }
  0x27   :  { %548 = vmatprep.subr.bf16.mxu1 %v599_v10 }
  0x29   :  { %571 = vmatpush3.bf16.msra.mxu0 %v606_v46 }
  0x2a   :  { %549 = vmatpush3.bf16.msra.mxu1 %v599_v10  ;;  %572 = vmatprep.subr.bf16.mxu0 %v607_v47 }
  0x2b   :  { %550 = vmatprep.subr.bf16.mxu1 %v600_v11 }
  0x2d   :  { %573 = vmatpush3.bf16.msra.mxu0 %v607_v47 }
  0x2e   :  { %551 = vmatpush3.bf16.msra.mxu1 %v600_v11  ;;  %574 = vmatprep.subr.bf16.mxu0 %v608_v48 }
  0x2f   :  { %552 = vmatprep.subr.bf16.mxu1 %v601_v12 }
  0x31   :  { %575 = vmatpush3.bf16.msra.mxu0 %v608_v48 }
  0x32   :  { %553 = vmatpush3.bf16.msra.mxu1 %v601_v12  ;;  %576 = vmatprep.subr.bf16.mxu0 %v609_v49 }
  0x35   :  { %577 = vmatpush3.bf16.msra.mxu0 %v609_v49 }
  0xea   :  { %v532_v17 = vpop.f32.mrb[0].mxu0 }
  0xeb   :  { %v140_v18 = vadd.f32 %v532_v17, %v471_v16  ;;  %v131_v19 = vpop.f32.mrb[1].mxu0 }
  0xec   :  { %v132_v20 = vadd.f32 %v471_v16, %v131_v19  ;;  %v533_v21 = vpop.f32.mrb[2].mxu0 }
  0xed   :  { %610 = vtanh.f32 %v140_v18  ;;  %v143_v22 = vadd.f32 %v533_v21, %v471_v16  ;;  %v134_v23 = vpop.f32.mrb[3].mxu0 }
  0xee   :  { %612 = vtanh.f32 %v132_v20  ;;  %v135_v24 = vadd.f32 %v471_v16, %v134_v23 }
  0xef   :  { %614 = vtanh.f32 %v143_v22 }
  0xf0   :  { %616 = vtanh.f32 %v135_v24 }
  0xf2   :  { %v536_v25 = vpop.f32.mrb[4].mxu0 }
  0xf3   :  { %v156_v26 = vadd.f32 %v536_v25, %v471_v16  ;;  %v147_v27 = vpop.f32.mrb[5].mxu0 }
  0xf4   :  { %v148_v28 = vadd.f32 %v471_v16, %v147_v27  ;;  %v537_v29 = vpop.f32.mrb[6].mxu0 }
  0xf5   :  { %618 = vtanh.f32 %v156_v26  ;;  %v159_v30 = vadd.f32 %v537_v29, %v471_v16  ;;  %v150_v31 = vpop.f32.mrb[7].mxu0 }
  0xf6   :  { %620 = vtanh.f32 %v148_v28  ;;  %v151_v32 = vadd.f32 %v471_v16, %v150_v31 }
  0xf7   :  { %v611_v33 = vpop.eup %610  ;;  %622 = vtanh.f32 %v159_v30 }
  0xf8   :  { %v613_v34 = vpop.eup %612  ;;  %624 = vtanh.f32 %v151_v32 }
  0xf9   :  { %v615_v35 = vpop.eup %614 }
  0xfa   :  { %v617_v36 = vpop.eup %616  ;;  %v171_v37 = vpack.c.bf16 %v615_v35, %v611_v33 }
  0xfb   :  { %v170_v38 = vpack.c.bf16 %v617_v36, %v613_v34 }
  0xfd   :  { %554 = vmatprep.mubr.bf16.mxu1 %v170_v38 }
  0xfe   :  { %555 = vmatmul.mubr.bf16.vlgmr.msra.gmra.mrb[0].mxu1 %v171_v37 }
  0xff   :  { %v619_v39 = vpop.eup %618 }
 0x100   :  { %v621_v40 = vpop.eup %620 }
 0x101   :  { %v623_v41 = vpop.eup %622 }
 0x102   :  { %v625_v42 = vpop.eup %624  ;;  %v173_v43 = vpack.c.bf16 %v623_v41, %v619_v39 }
 0x103   :  { %v172_v44 = vpack.c.bf16 %v625_v42, %v621_v40 }
 0x105   :  { %558 = vmatprep.mubr.bf16.mxu1 %v172_v44 }
 0x106   :  { %559 = vmatmul.mubr.bf16.gmra.mrb[4].mxu1 %v173_v43 }
 0x1d1   :  { %v556_v51 = vpop.f32.mrb[0].mxu1 }
 0x1d2   :  { %v288_v52 = vadd.f32 %v556_v51, %v481_v50  ;;  %v279_v53 = vpop.f32.mrb[1].mxu1 }
 0x1d3   :  { %v280_v54 = vadd.f32 %v481_v50, %v279_v53  ;;  %v557_v55 = vpop.f32.mrb[2].mxu1 }
 0x1d4   :  { %626 = vtanh.f32 %v288_v52  ;;  %v291_v56 = vadd.f32 %v557_v55, %v481_v50  ;;  %v282_v57 = vpop.f32.mrb[3].mxu1 }
 0x1d5   :  { %628 = vtanh.f32 %v280_v54  ;;  %v283_v58 = vadd.f32 %v481_v50, %v282_v57 }
 0x1d6   :  { %630 = vtanh.f32 %v291_v56 }
 0x1d7   :  { %632 = vtanh.f32 %v283_v58 }
 0x1d9   :  { %v560_v59 = vpop.f32.mrb[4].mxu1 }
 0x1da   :  { %v304_v60 = vadd.f32 %v560_v59, %v481_v50  ;;  %v295_v61 = vpop.f32.mrb[5].mxu1 }
 0x1db   :  { %v296_v62 = vadd.f32 %v481_v50, %v295_v61  ;;  %v561_v63 = vpop.f32.mrb[6].mxu1 }
 0x1dc   :  { %634 = vtanh.f32 %v304_v60  ;;  %v307_v0 = vadd.f32 %v561_v63, %v481_v50  ;;  %v298_v1 = vpop.f32.mrb[7].mxu1 }
 0x1dd   :  { %636 = vtanh.f32 %v296_v62  ;;  %v299_v2 = vadd.f32 %v481_v50, %v298_v1 }
 0x1de   :  { %v627_v3 = vpop.eup %626  ;;  %638 = vtanh.f32 %v307_v0 }
 0x1df   :  { %v629_v4 = vpop.eup %628  ;;  %640 = vtanh.f32 %v299_v2 }
 0x1e0   :  { %v631_v5 = vpop.eup %630 }
 0x1e1   :  { %v633_v6 = vpop.eup %632  ;;  %v319_v7 = vpack.c.bf16 %v631_v5, %v627_v3 }
 0x1e2   :  { %v318_v8 = vpack.c.bf16 %v633_v6, %v629_v4 }
 0x1e4   :  { %578 = vmatprep.mubr.bf16.mxu0 %v318_v8 }
 0x1e5   :  { %579 = vmatmul.mubr.bf16.vlgmr.msra.gmra.mrb[8].mxu0 %v319_v7 }
 0x1e6   :  { %v635_v9 = vpop.eup %634 }
 0x1e7   :  { %v637_v10 = vpop.eup %636 }
 0x1e8   :  { %v639_v11 = vpop.eup %638 }
 0x1e9   :  { %v641_v12 = vpop.eup %640  ;;  %v321_v13 = vpack.c.bf16 %v639_v11, %v635_v9 }
 0x1ea   :  { %v320_v14 = vpack.c.bf16 %v641_v12, %v637_v10 }
 0x1ec   :  { %582 = vmatprep.mubr.bf16.mxu0 %v320_v14 }
 0x1ed   :  { %583 = vmatmul.mubr.bf16.gmra.mrb[12].mxu0 %v321_v13 }
 0x2b8   :  { %v580_v16 = vpop.f32.mrb[8].mxu0 }
 0x2b9   :  { %v436_v17 = vadd.f32 %v580_v16, %v490_v15  ;;  %v427_v18 = vpop.f32.mrb[9].mxu0 }
 0x2ba   :  { %v428_v19 = vadd.f32 %v490_v15, %v427_v18  ;;  %v581_v20 = vpop.f32.mrb[10].mxu0 }
 0x2bb   :  { %460 = vst [vmem:[%s804_s7 + $0x10] sm:$0xff] %v436_v17  ;;  %v439_v21 = vadd.f32 %v581_v20, %v490_v15  ;;  %v430_v22 = vpop.f32.mrb[11].mxu0 }
 0x2bc   :  { %458 = vst [vmem:[%s804_s7] sm:$0xff] %v428_v19  ;;  %v431_v23 = vadd.f32 %v490_v15, %v430_v22 }
 0x2bd   :  { %461 = vst [vmem:[%s804_s7 + $0x18] sm:$0xff] %v439_v21 }
 0x2be   :  { %459 = vst [vmem:[%s804_s7 + $0x8] sm:$0xff] %v431_v23 }
 0x2c0   :  { %v584_v24 = vpop.f32.mrb[12].mxu0 }
 0x2c1   :  { %v452_v25 = vadd.f32 %v584_v24, %v490_v15  ;;  %v443_v26 = vpop.f32.mrb[13].mxu0 }
 0x2c2   :  { %v444_v27 = vadd.f32 %v490_v15, %v443_v26  ;;  %v585_v28 = vpop.f32.mrb[14].mxu0 }
 0x2c3   :  { %464 = vst [vmem:[%s804_s7 + $0x30] sm:$0xff] %v452_v25  ;;  %v455_v29 = vadd.f32 %v585_v28, %v490_v15  ;;  %v446_v30 = vpop.f32.mrb[15].mxu0 }
 0x2c4   :  { %462 = vst [vmem:[%s804_s7 + $0x20] sm:$0xff] %v444_v27  ;;  %v447_v31 = vadd.f32 %v490_v15, %v446_v30 }
 0x2c5   :  { %465 = vst [vmem:[%s804_s7 + $0x38] sm:$0xff] %v455_v29 }
 0x2c6   :  { %463 = vst [vmem:[%s804_s7 + $0x28] sm:$0xff] %v447_v31 }
 0x2c7   :  { %470 = vsyncpa [#allocation3], 1 }

// kernel: fwd.1
= control target key start
LH: loop header
LB: loop body
LE: loop exit
PB: predicated region body
PF: predicated region fallthrough
CT: control target
= control target key end

     0   :  { %12 = vsyncpa [#allocation3], 0  ;;  %s666_s24 = smov [#allocation2]   ;;  %s797_s0 = inlined_call_operand.vmem [shape: bf16[64,16], index: 0, kind: input, shape index: {}]   ;;  %s798_s1 = inlined_call_operand.vmem [shape: bf16[16,128], index: 1, kind: input, shape index: {}]   ;;  %s799_s2 = inlined_call_operand.vmem [shape: f32[1,128], index: 2, kind: input, shape index: {}]   ;;  %s800_s3 = inlined_call_operand.vmem [shape: bf16[128,128], index: 3, kind: input, shape index: {}]   ;;  %s801_s4 = inlined_call_operand.vmem [shape: f32[1,128], index: 4, kind: input, shape index: {}]   ;;  %s802_s5 = inlined_call_operand.hbm [shape: bf16[128,128], index: 5, kind: input, shape index: {}]   ;;  %s803_s6 = inlined_call_operand.vmem [shape: f32[1,128], index: 6, kind: input, shape index: {}]   ;;  %s804_s7 = inlined_call_operand.vmem [shape: f32[64,128], index: 7, kind: output, shape index: {}]  }
   0x1   :  { %s28_s25 = sshll.u32 %s666_s24, 4  ;;  %s642_s28 = scalar_lea.hbm %s802_s5, 1024  ;;  %s29_s25 = int_to_ptr.vmem [resolvable:$true] %s28_s25 }
   0x2   :  { %p643_p0 = scmp.ne.s32.totalorder %s802_s5, %s642_s28  ;;  %p646_p1 = scmp.lt.u32.totalorder %s642_s28, %s802_s5 }
   0x4   :  { %p648_p2 = pnand %p646_p1, %p643_p0 }
   0x6   :  { %651 = shalt.err (!%p648_p2)
}
   0x7   :  { %s652_s10 = scalar_lea.vmem %s29_s25, 1024  ;;  %p657_p4 = scmp.lt.s32.totalorder %s29_s25, %s29_s25 }
   0x8   :  { %p653_p3 = scmp.ne.s32.totalorder %s29_s25, %s652_s10  ;;  %p658_p5 = scmp.lt.s32.totalorder %s652_s10, %s652_s10 }
   0xa   :  { %p659_p6 = por %p658_p5, %p657_p4 }
   0xc   :  { %p660_p7 = pnand %p659_p6, %p653_p3 }
   0xe   :  { %663 = shalt.err (!%p660_p7)
}
   0xf   :  { %s667_s11 = smov 64   ;;  %s668_s12 = smov 4  }
  0x10   :  { %34 = dma.hbm_to_vmem [thread:$0]  %s802_s5, 1024, %s29_s25, [#allocation3], %s667_s11, %s667_s11, %s668_s12  }
  0x11   :  { %664 = dma.done.wait [#allocation3], 1024  }
  0x12   :  { %665 = vsyncadd [#allocation3], 4294966272  ;;  %v589_v0 = vld [vmem:[%s798_s1] sm:$0xff]   ;;  %vm84_vm0 = vcmask 130048   ;;  %v591_v2 = vld [vmem:[%s797_s0 + $0x8] sm:$0xff]  }
  0x13   :  { %v590_v1 = vld [vmem:[%s797_s0] sm:$0xff]   ;;  %528 = vmatprep.subr.bf16.mxu0 %v589_v0  ;;  %v592_v3 = vld [vmem:[%s797_s0 + $0x10] sm:$0xff]   ;;  %v595_v5 = vld [vmem:[%s800_s3 + $0x8] sm:$0xff]  }
  0x14   :  { %529 = vmatpush3.bf16.msra.mxu0 %v589_v0  ;;  %530 = vmatprep.mubr.msk.bf16.mxu0 %vm84_vm0, %v590_v1  ;;  %v594_v4 = vld [vmem:[%s800_s3] sm:$0xff]   ;;  %v596_v6 = vld [vmem:[%s800_s3 + $0x10] sm:$0xff]   ;;  %v593_v7 = vld [vmem:[%s797_s0 + $0x18] sm:$0xff]  }
  0x15   :  { %538 = vmatprep.subr.bf16.mxu1 %v594_v4  ;;  %v597_v8 = vld [vmem:[%s800_s3 + $0x18] sm:$0xff]   ;;  %v598_v9 = vld [vmem:[%s800_s3 + $0x20] sm:$0xff]   ;;  %v599_v10 = vld [vmem:[%s800_s3 + $0x28] sm:$0xff]  }
  0x16   :  { %539 = vmatpush3.bf16.msra.mxu1 %v594_v4  ;;  %v600_v11 = vld [vmem:[%s800_s3 + $0x30] sm:$0xff]   ;;  %v601_v12 = vld [vmem:[%s800_s3 + $0x38] sm:$0xff]   ;;  %v602_v13 = vld [vmem:[#allocation2] sm:$0xff]  }
  0x17   :  { %531 = vmatmul.mubr.msk.bf16.vlgmr.msra.gmra.mrb[0].mxu0 %vm84_vm0, %v591_v2  ;;  %540 = vmatprep.subr.bf16.mxu1 %v595_v5  ;;  %v603_v14 = vld [vmem:[#allocation2 + $0x8] sm:$0xff]   ;;  %v604_v15 = vld [vmem:[#allocation2 + $0x10] sm:$0xff]   ;;  %v471_v16 = vld [vmem:[%s799_s2] ss:$0 sm:$0xff] }
  0x18   :  { %534 = vmatprep.mubr.msk.bf16.mxu0 %vm84_vm0, %v592_v3  ;;  %562 = vmatprep.subr.bf16.mxu0 %v602_v13  ;;  %v605_v45 = vld [vmem:[#allocation2 + $0x18] sm:$0xff]   ;;  %v606_v46 = vld [vmem:[#allocation2 + $0x20] sm:$0xff]   ;;  %v607_v47 = vld [vmem:[#allocation2 + $0x28] sm:$0xff]  }
  0x19   :  { %563 = vmatpush3.bf16.msra.mxu0 %v602_v13  ;;  %v608_v48 = vld [vmem:[#allocation2 + $0x30] sm:$0xff]   ;;  %v609_v49 = vld [vmem:[#allocation2 + $0x38] sm:$0xff]   ;;  %v481_v50 = vld [vmem:[%s801_s4] ss:$0 sm:$0xff] }
  0x1a   :  { %541 = vmatpush3.bf16.msra.mxu1 %v595_v5  ;;  %564 = vmatprep.subr.bf16.mxu0 %v603_v14 }
  0x1b   :  { %542 = vmatprep.subr.bf16.mxu1 %v596_v6 }
  0x1d   :  { %565 = vmatpush3.bf16.msra.mxu0 %v603_v14 }
  0x1e   :  { %543 = vmatpush3.bf16.msra.mxu1 %v596_v6  ;;  %566 = vmatprep.subr.bf16.mxu0 %v604_v15 }
  0x1f   :  { %535 = vmatmul.mubr.msk.bf16.gmra.mrb[4].mxu0 %vm84_vm0, %v593_v7  ;;  %544 = vmatprep.subr.bf16.mxu1 %v597_v8 }
  0x21   :  { %567 = vmatpush3.bf16.msra.mxu0 %v604_v15  ;;  %v490_v15 = vld [vmem:[%s803_s6] ss:$0 sm:$0xff] }
  0x22   :  { %545 = vmatpush3.bf16.msra.mxu1 %v597_v8  ;;  %568 = vmatprep.subr.bf16.mxu0 %v605_v45 }
  0x23   :  { %546 = vmatprep.subr.bf16.mxu1 %v598_v9 }
  0x25   :  { %569 = vmatpush3.bf16.msra.mxu0 %v605_v45 }
  0x26   :  { %547 = vmatpush3.bf16.msra.mxu1 %v598_v9  ;;  %570 = vmatprep.subr.bf16.mxu0 %v606_v46 }
  0x27   :  { %548 = vmatprep.subr.bf16.mxu1 %v599_v10 }
  0x29   :  { %571 = vmatpush3.bf16.msra.mxu0 %v606_v46 }
  0x2a   :  { %549 = vmatpush3.bf16.msra.mxu1 %v599_v10  ;;  %572 = vmatprep.subr.bf16.mxu0 %v607_v47 }
  0x2b   :  { %550 = vmatprep.subr.bf16.mxu1 %v600_v11 }
  0x2d   :  { %573 = vmatpush3.bf16.msra.mxu0 %v607_v47 }
  0x2e   :  { %551 = vmatpush3.bf16.msra.mxu1 %v600_v11  ;;  %574 = vmatprep.subr.bf16.mxu0 %v608_v48 }
  0x2f   :  { %552 = vmatprep.subr.bf16.mxu1 %v601_v12 }
  0x31   :  { %575 = vmatpush3.bf16.msra.mxu0 %v608_v48 }
  0x32   :  { %553 = vmatpush3.bf16.msra.mxu1 %v601_v12  ;;  %576 = vmatprep.subr.bf16.mxu0 %v609_v49 }
  0x35   :  { %577 = vmatpush3.bf16.msra.mxu0 %v609_v49 }
  0xea   :  { %v532_v17 = vpop.f32.mrb[0].mxu0 }
  0xeb   :  { %v140_v18 = vadd.f32 %v532_v17, %v471_v16  ;;  %v131_v19 = vpop.f32.mrb[1].mxu0 }
  0xec   :  { %v132_v20 = vadd.f32 %v471_v16, %v131_v19  ;;  %v533_v21 = vpop.f32.mrb[2].mxu0 }
  0xed   :  { %610 = vtanh.f32 %v140_v18  ;;  %v143_v22 = vadd.f32 %v533_v21, %v471_v16  ;;  %v134_v23 = vpop.f32.mrb[3].mxu0 }
  0xee   :  { %612 = vtanh.f32 %v132_v20  ;;  %v135_v24 = vadd.f32 %v471_v16, %v134_v23 }
  0xef   :  { %614 = vtanh.f32 %v143_v22 }
  0xf0   :  { %616 = vtanh.f32 %v135_v24 }
  0xf2   :  { %v536_v25 = vpop.f32.mrb[4].mxu0 }
  0xf3   :  { %v156_v26 = vadd.f32 %v536_v25, %v471_v16  ;;  %v147_v27 = vpop.f32.mrb[5].mxu0 }
  0xf4   :  { %v148_v28 = vadd.f32 %v471_v16, %v147_v27  ;;  %v537_v29 = vpop.f32.mrb[6].mxu0 }
  0xf5   :  { %618 = vtanh.f32 %v156_v26  ;;  %v159_v30 = vadd.f32 %v537_v29, %v471_v16  ;;  %v150_v31 = vpop.f32.mrb[7].mxu0 }
  0xf6   :  { %620 = vtanh.f32 %v148_v28  ;;  %v151_v32 = vadd.f32 %v471_v16, %v150_v31 }
  0xf7   :  { %v611_v33 = vpop.eup %610  ;;  %622 = vtanh.f32 %v159_v30 }
  0xf8   :  { %v613_v34 = vpop.eup %612  ;;  %624 = vtanh.f32 %v151_v32 }
  0xf9   :  { %v615_v35 = vpop.eup %614 }
  0xfa   :  { %v617_v36 = vpop.eup %616  ;;  %v171_v37 = vpack.c.bf16 %v615_v35, %v611_v33 }
  0xfb   :  { %v170_v38 = vpack.c.bf16 %v617_v36, %v613_v34 }
  0xfd   :  { %554 = vmatprep.mubr.bf16.mxu1 %v170_v38 }
  0xfe   :  { %555 = vmatmul.mubr.bf16.vlgmr.msra.gmra.mrb[0].mxu1 %v171_v37 }
  0xff   :  { %v619_v39 = vpop.eup %618 }
 0x100   :  { %v621_v40 = vpop.eup %620 }
 0x101   :  { %v623_v41 = vpop.eup %622 }
 0x102   :  { %v625_v42 = vpop.eup %624  ;;  %v173_v43 = vpack.c.bf16 %v623_v41, %v619_v39 }
 0x103   :  { %v172_v44 = vpack.c.bf16 %v625_v42, %v621_v40 }
 0x105   :  { %558 = vmatprep.mubr.bf16.mxu1 %v172_v44 }
 0x106   :  { %559 = vmatmul.mubr.bf16.gmra.mrb[4].mxu1 %v173_v43 }
 0x1d1   :  { %v556_v51 = vpop.f32.mrb[0].mxu1 }
 0x1d2   :  { %v288_v52 = vadd.f32 %v556_v51, %v481_v50  ;;  %v279_v53 = vpop.f32.mrb[1].mxu1 }
 0x1d3   :  { %v280_v54 = vadd.f32 %v481_v50, %v279_v53  ;;  %v557_v55 = vpop.f32.mrb[2].mxu1 }
 0x1d4   :  { %626 = vtanh.f32 %v288_v52  ;;  %v291_v56 = vadd.f32 %v557_v55, %v481_v50  ;;  %v282_v57 = vpop.f32.mrb[3].mxu1 }
 0x1d5   :  { %628 = vtanh.f32 %v280_v54  ;;  %v283_v58 = vadd.f32 %v481_v50, %v282_v57 }
 0x1d6   :  { %630 = vtanh.f32 %v291_v56 }
 0x1d7   :  { %632 = vtanh.f32 %v283_v58 }
 0x1d9   :  { %v560_v59 = vpop.f32.mrb[4].mxu1 }
 0x1da   :  { %v304_v60 = vadd.f32 %v560_v59, %v481_v50  ;;  %v295_v61 = vpop.f32.mrb[5].mxu1 }
 0x1db   :  { %v296_v62 = vadd.f32 %v481_v50, %v295_v61  ;;  %v561_v63 = vpop.f32.mrb[6].mxu1 }
 0x1dc   :  { %634 = vtanh.f32 %v304_v60  ;;  %v307_v0 = vadd.f32 %v561_v63, %v481_v50  ;;  %v298_v1 = vpop.f32.mrb[7].mxu1 }
 0x1dd   :  { %636 = vtanh.f32 %v296_v62  ;;  %v299_v2 = vadd.f32 %v481_v50, %v298_v1 }
 0x1de   :  { %v627_v3 = vpop.eup %626  ;;  %638 = vtanh.f32 %v307_v0 }
 0x1df   :  { %v629_v4 = vpop.eup %628  ;;  %640 = vtanh.f32 %v299_v2 }
 0x1e0   :  { %v631_v5 = vpop.eup %630 }
 0x1e1   :  { %v633_v6 = vpop.eup %632  ;;  %v319_v7 = vpack.c.bf16 %v631_v5, %v627_v3 }
 0x1e2   :  { %v318_v8 = vpack.c.bf16 %v633_v6, %v629_v4 }
 0x1e4   :  { %578 = vmatprep.mubr.bf16.mxu0 %v318_v8 }
 0x1e5   :  { %579 = vmatmul.mubr.bf16.vlgmr.msra.gmra.mrb[8].mxu0 %v319_v7 }
 0x1e6   :  { %v635_v9 = vpop.eup %634 }
 0x1e7   :  { %v637_v10 = vpop.eup %636 }
 0x1e8   :  { %v639_v11 = vpop.eup %638 }
 0x1e9   :  { %v641_v12 = vpop.eup %640  ;;  %v321_v13 = vpack.c.bf16 %v639_v11, %v635_v9 }
 0x1ea   :  { %v320_v14 = vpack.c.bf16 %v641_v12, %v637_v10 }
 0x1ec   :  { %582 = vmatprep.mubr.bf16.mxu0 %v320_v14 }
 0x1ed   :  { %583 = vmatmul.mubr.bf16.gmra.mrb[12].mxu0 %v321_v13 }
 0x2b8   :  { %v580_v16 = vpop.f32.mrb[8].mxu0 }
 0x2b9   :  { %v436_v17 = vadd.f32 %v580_v16, %v490_v15  ;;  %v427_v18 = vpop.f32.mrb[9].mxu0 }
 0x2ba   :  { %v428_v19 = vadd.f32 %v490_v15, %v427_v18  ;;  %v581_v20 = vpop.f32.mrb[10].mxu0 }
 0x2bb   :  { %460 = vst [vmem:[%s804_s7 + $0x10] sm:$0xff] %v436_v17  ;;  %v439_v21 = vadd.f32 %v581_v20, %v490_v15  ;;  %v430_v22 = vpop.f32.mrb[11].mxu0 }
 0x2bc   :  { %458 = vst [vmem:[%s804_s7] sm:$0xff] %v428_v19  ;;  %v431_v23 = vadd.f32 %v490_v15, %v430_v22 }
 0x2bd   :  { %461 = vst [vmem:[%s804_s7 + $0x18] sm:$0xff] %v439_v21 }
 0x2be   :  { %459 = vst [vmem:[%s804_s7 + $0x8] sm:$0xff] %v431_v23 }
 0x2c0   :  { %v584_v24 = vpop.f32.mrb[12].mxu0 }
 0x2c1   :  { %v452_v25 = vadd.f32 %v584_v24, %v490_v15  ;;  %v443_v26 = vpop.f32.mrb[13].mxu0 }
 0x2c2   :  { %v444_v27 = vadd.f32 %v490_v15, %v443_v26  ;;  %v585_v28 = vpop.f32.mrb[14].mxu0 }
 0x2c3   :  { %464 = vst [vmem:[%s804_s7 + $0x30] sm:$0xff] %v452_v25  ;;  %v455_v29 = vadd.f32 %v585_v28, %v490_v15  ;;  %v446_v30 = vpop.f32.mrb[15].mxu0 }
 0x2c4   :  { %462 = vst [vmem:[%s804_s7 + $0x20] sm:$0xff] %v444_v27  ;;  %v447_v31 = vadd.f32 %v490_v15, %v446_v30 }
 0x2c5   :  { %465 = vst [vmem:[%s804_s7 + $0x38] sm:$0xff] %v455_v29 }
 0x2c6   :  { %463 = vst [vmem:[%s804_s7 + $0x28] sm:$0xff] %v447_v31 }
 0x2c7   :  { %470 = vsyncpa [#allocation3], 1 }

</bundles_post_ra>
